<compile_context>
chip_gen: v7x
topology: tpu7x:2x2x1
jax: 0.10.0
libtpu: 0.0.40
codegen_flags: <defaults>
</compile_context>

<pallas_src>
import jax
import jax.numpy as jnp
from jax.experimental import pallas as pl
from jax.experimental.pallas import tpu as pltpu

LANE = 128          # lane width: pad weight/bias/output last dims to this
SUBLANE_BF16 = 16   # bf16 sublane packing: batch tiles are multiples of this
NEG_INF = -1e30     # finite large-negative bias for padded action columns


def _round_up(x, m):
    return ((x + m - 1) // m) * m


def _bf16_vpu():
    """True on chips with a bf16 VPU (v6e / v7x); keep f32 bias/ReLU on v5e."""
    try:
        kind = jax.devices()[0].device_kind.lower()
    except Exception:
        return False
    return any(tag in kind for tag in ("v6", "v7", "7x"))


def _choose_tb(batch):
    """Batch tile: minimal padding for small batches; >=2 parallel grid steps
    for mid-size batches (v7x dual TensorCore); 128-row tiles for large."""
    b = _round_up(max(batch, 1), SUBLANE_BF16)
    if b <= 64:
        return b
    if b <= 256:
        return _round_up((b + 1) // 2, SUBLANE_BF16)
    return 128


def _make_actor_kernel(bf16_act):
    def kernel(x_ref, w1_ref, b1_ref, w2_ref, b2_ref, pi_ref):
        x = x_ref[...]                                   # bf16 activations
        if bf16_act:
            # v6e/v7x: bf16 VPU -> bias + ReLU in bf16, no extra pack later.
            h = jnp.dot(x, w1_ref[...], preferred_element_type=jnp.bfloat16)
            h = jnp.maximum(h + b1_ref[...].astype(jnp.bfloat16), 0)
        else:
            # v5e: no bf16 VPU -> f32 bias/ReLU, then pack for the 2nd matmul.
            h32 = jnp.dot(x, w1_ref[...],
                          preferred_element_type=jnp.float32) + b1_ref[...]
            h = jnp.maximum(h32, 0.0).astype(jnp.bfloat16)

        # pi head: MXU matmul with f32 accumulation; bias in f32.
        logits = jnp.dot(h, w2_ref[...],
                         preferred_element_type=jnp.float32) + b2_ref[...]

        # Numerically stable softmax over actions (lane axis).  Padded action
        # columns carry a finite -1e30 bias -> exp underflows to exactly 0.
        # Exact division (not approx reciprocal): pi feeds RL log-probs.
        m = jnp.max(logits, axis=1, keepdims=True)
        e = jnp.exp(logits - m)
        denom = jnp.sum(e, axis=1, keepdims=True)
        pi_ref[...] = (e / denom).astype(pi_ref.dtype)

    return kernel


def actor_forward(state, w1, b1, w2, b2, *, n_actions, tb=None, bf16_act=None):
    """state: (B, input_dims) f32.  w1: (d_in_p, fc1_p) bf16, w2: (fc1_p, act_p)
    bf16, b1/b2: (1, .) f32 (lane-padded).  Returns (B, n_actions) f32 softmax."""
    B, d_in = state.shape
    d_in_p, fc1_p = w1.shape
    act_p = w2.shape[1]

    if bf16_act is None:
        bf16_act = _bf16_vpu()
    if tb is None:
        tb = _choose_tb(B)
    b_pad = _round_up(_round_up(max(B, 1), SUBLANE_BF16), tb)

    # bf16 cast + (small) batch/feature pad fused in one cheap XLA op; the
    # feature axis stays at its real (16-rounded) width -- no 128-wide copy.
    x = state.astype(jnp.bfloat16)
    if (b_pad, d_in_p) != (B, d_in):
        x = jnp.pad(x, ((0, b_pad - B), (0, d_in_p - d_in)))

    grid = (b_pad // tb,)

    cost = pl.CostEstimate(
        flops=2 * b_pad * fc1_p * (d_in_p + act_p),
        transcendentals=b_pad * act_p,
        bytes_accessed=(x.size * 2 + w1.size * 2 + w2.size * 2
                        + b1.size * 4 + b2.size * 4 + b_pad * act_p * 4),
    )

    pi_padded = pl.pallas_call(
        _make_actor_kernel(bf16_act),
        out_shape=jax.ShapeDtypeStruct((b_pad, act_p), jnp.float32),
        grid_spec=pltpu.PrefetchScalarGridSpec(
            num_scalar_prefetch=0,
            grid=grid,
            in_specs=[
                pl.BlockSpec((tb, d_in_p), lambda i: (i, 0)),     # x tile (bf16)
                pl.BlockSpec((d_in_p, fc1_p), lambda i: (0, 0)),  # W1 VMEM-resident
                pl.BlockSpec((1, fc1_p), lambda i: (0, 0)),       # b1 VMEM-resident
                pl.BlockSpec((fc1_p, act_p), lambda i: (0, 0)),   # W2 VMEM-resident
                pl.BlockSpec((1, act_p), lambda i: (0, 0)),       # b2 VMEM-resident
            ],
            out_specs=pl.BlockSpec((tb, act_p), lambda i: (i, 0)),
        ),
        compiler_params=pltpu.CompilerParams(
            # Independent batch tiles -> shard across v7x's 2 TensorCores.
            dimension_semantics=("parallel",),
        ),
        cost_estimate=cost,
    )(x, w1, b1, w2, b2)

    return pi_padded[:B, :n_actions]


def init_actor_params(key, input_dims, fc1_dims, n_actions):
    """nn.Linear-style U[-1/sqrt(fan_in), +1/sqrt(fan_in)] init, stored
    pre-transposed as (in, out).  Only the lane (output) dims are padded to
    128 (256-alignment for v6e/v7x MXU only pays off at much larger layers);
    the input dim is rounded to the bf16 sublane pack of 16 (no-op here).
    Weights bf16 (MXU operands); biases f32.  Padded action columns get a
    finite large-negative bias so softmax ignores them; padded fc1 units are 0."""
    k1, k2, k3, k4 = jax.random.split(key, 4)
    d_in_p = _round_up(input_dims, SUBLANE_BF16)
    fc1_p = _round_up(fc1_dims, LANE)
    act_p = _round_up(n_actions, LANE)

    bound1 = 1.0 / float(input_dims) ** 0.5
    bound2 = 1.0 / float(fc1_dims) ** 0.5

    w1 = jnp.zeros((d_in_p, fc1_p), jnp.float32).at[:input_dims, :fc1_dims].set(
        jax.random.uniform(k1, (input_dims, fc1_dims), jnp.float32, -bound1, bound1))
    b1 = jnp.zeros((1, fc1_p), jnp.float32).at[:, :fc1_dims].set(
        jax.random.uniform(k2, (1, fc1_dims), jnp.float32, -bound1, bound1))
    w2 = jnp.zeros((fc1_p, act_p), jnp.float32).at[:fc1_dims, :n_actions].set(
        jax.random.uniform(k3, (fc1_dims, n_actions), jnp.float32, -bound2, bound2))
    b2 = jnp.full((1, act_p), NEG_INF, jnp.float32).at[:, :n_actions].set(
        jax.random.uniform(k4, (1, n_actions), jnp.float32, -bound2, bound2))

    return w1.astype(jnp.bfloat16), b1, w2.astype(jnp.bfloat16), b2


def reference_forward(state, w1, b1, w2, b2, n_actions, bf16_act):
    """Plain-JAX reference doing the same math as the kernel (bf16 matmul
    operands, f32 accumulation, same bias/ReLU precision path)."""
    B, d_in = state.shape
    d_in_p = w1.shape[0]
    x = jnp.pad(state.astype(jnp.bfloat16), ((0, 0), (0, d_in_p - d_in)))
    if bf16_act:
        h = jnp.maximum(
            jnp.dot(x, w1, preferred_element_type=jnp.bfloat16)
            + b1.astype(jnp.bfloat16), 0)
    else:
        h = jnp.maximum(
            jnp.dot(x, w1, preferred_element_type=jnp.float32) + b1,
            0.0).astype(jnp.bfloat16)
    logits = jnp.dot(h, w2, preferred_element_type=jnp.float32) + b2
    return jax.nn.softmax(logits, axis=1)[:, :n_actions]


if __name__ == "__main__":
    # Small shapes consistent with ActorNetwork.forward (state is (batch, input_dims)).
    # Note: fc2_dims exists in __init__ but is unused in forward().
    batch, input_dims, fc1_dims, n_actions = 8, 32, 64, 16

    key = jax.random.PRNGKey(0)
    k_state, k_params, k_big = jax.random.split(key, 3)
    state = jax.random.normal(k_state, (batch, input_dims), jnp.float32)
    w1, b1, w2, b2 = init_actor_params(k_params, input_dims, fc1_dims, n_actions)
    bf16_act = _bf16_vpu()

    # Small batch: single 16-row tile, grid=(1,).
    pi = jax.block_until_ready(
        actor_forward(state, w1, b1, w2, b2, n_actions=n_actions, bf16_act=bf16_act))
    pi_ref = reference_forward(state, w1, b1, w2, b2, n_actions, bf16_act)
    assert pi.shape == (batch, n_actions)
    assert jnp.allclose(jnp.sum(pi, axis=1), 1.0, atol=1e-3)
    assert jnp.allclose(pi, pi_ref, atol=2e-3, rtol=2e-3)

    # Larger batch: 200 -> padded 224 -> two 112-row parallel tiles
    # (exercises a multi-step grid; both TensorCores on v7x).
    big_state = jax.random.normal(k_big, (200, input_dims), jnp.float32)
    pi_big = jax.block_until_ready(
        actor_forward(big_state, w1, b1, w2, b2, n_actions=n_actions, bf16_act=bf16_act))
    pi_big_ref = reference_forward(big_state, w1, b1, w2, b2, n_actions, bf16_act)
    assert pi_big.shape == (200, n_actions)
    assert jnp.allclose(jnp.sum(pi_big, axis=1), 1.0, atol=1e-3)
    assert jnp.allclose(pi_big, pi_big_ref, atol=2e-3, rtol=2e-3)

    print("KERNEL_OK")
</pallas_src>

<mosaic_0001>
module attributes {stable_mosaic.version = 11 : i64} {
  func.func @kernel(%arg0: i32, %arg1: memref<16x32xbf16, #tpu.memory_space<vmem>>, %arg2: memref<32x128xbf16, #tpu.memory_space<vmem>>, %arg3: memref<1x128xf32, #tpu.memory_space<vmem>>, %arg4: memref<128x128xbf16, #tpu.memory_space<vmem>>, %arg5: memref<1x128xf32, #tpu.memory_space<vmem>>, %arg6: memref<16x128xf32, #tpu.memory_space<vmem>>) attributes {dimension_semantics = [#tpu.dimension_semantics<parallel>], iteration_bounds = array<i64: 1>, scalar_prefetch = 0 : i64, scratch_operands = 0 : i64, tpu.core_type = #tpu.core_type<tc>, window_params = [{transform_indices = @transform_0, window_bounds = array<i64: 16, 32>}, {pipeline_mode = #tpu.pipeline_mode<synchronous>, transform_indices = @transform_1, window_bounds = array<i64: 32, 128>}, {pipeline_mode = #tpu.pipeline_mode<synchronous>, transform_indices = @transform_2, window_bounds = array<i64: 1, 128>}, {pipeline_mode = #tpu.pipeline_mode<synchronous>, transform_indices = @transform_3, window_bounds = array<i64: 128, 128>}, {pipeline_mode = #tpu.pipeline_mode<synchronous>, transform_indices = @transform_4, window_bounds = array<i64: 1, 128>}, {transform_indices = @transform_5, window_bounds = array<i64: 16, 128>}]} {
    %c0 = arith.constant 0 : index
    %c0_0 = arith.constant 0 : index
    %0 = vector.load %arg1[%c0, %c0_0] : memref<16x32xbf16, #tpu.memory_space<vmem>>, vector<16x32xbf16>
    %c0_1 = arith.constant 0 : index
    %c0_2 = arith.constant 0 : index
    %1 = vector.load %arg2[%c0_1, %c0_2] : memref<32x128xbf16, #tpu.memory_space<vmem>>, vector<32x128xbf16>
    %cst = arith.constant dense<0.000000e+00> : vector<16x128xf32>
    %2 = tpu.matmul %0, %1, %cst {dimension_numbers = #tpu.dot_dimension_numbers<[1], [0], [0], [1], [0, 0, 1, 1], [], []>} : vector<16x32xbf16>, vector<32x128xbf16>, vector<16x128xf32> -> vector<16x128xf32>
    %c0_3 = arith.constant 0 : index
    %c0_4 = arith.constant 0 : index
    %3 = vector.load %arg3[%c0_3, %c0_4] : memref<1x128xf32, #tpu.memory_space<vmem>>, vector<1x128xf32>
    %4 = vector.broadcast %3 : vector<1x128xf32> to vector<16x128xf32>
    %5 = arith.addf %2, %4 : vector<16x128xf32>
    %cst_5 = arith.constant 0.000000e+00 : f32
    %6 = vector.broadcast %cst_5 : f32 to vector<16x128xf32>
    %7 = arith.maximumf %5, %6 : vector<16x128xf32>
    %8 = arith.truncf %7 : vector<16x128xf32> to vector<16x128xbf16>
    %c0_6 = arith.constant 0 : index
    %c0_7 = arith.constant 0 : index
    %9 = vector.load %arg4[%c0_6, %c0_7] : memref<128x128xbf16, #tpu.memory_space<vmem>>, vector<128x128xbf16>
    %cst_8 = arith.constant dense<0.000000e+00> : vector<16x128xf32>
    %10 = tpu.matmul %8, %9, %cst_8 {dimension_numbers = #tpu.dot_dimension_numbers<[1], [0], [0], [1], [0, 0, 1, 1], [], []>} : vector<16x128xbf16>, vector<128x128xbf16>, vector<16x128xf32> -> vector<16x128xf32>
    %c0_9 = arith.constant 0 : index
    %c0_10 = arith.constant 0 : index
    %11 = vector.load %arg5[%c0_9, %c0_10] : memref<1x128xf32, #tpu.memory_space<vmem>>, vector<1x128xf32>
    %12 = vector.broadcast %11 : vector<1x128xf32> to vector<16x128xf32>
    %13 = arith.addf %10, %12 : vector<16x128xf32>
    %cst_11 = arith.constant dense<0xFF800000> : vector<16xf32>
    %14 = vector.multi_reduction <maximumf>, %13, %cst_11 [1] : vector<16x128xf32> to vector<16xf32>
    %15 = vector.shape_cast %14 : vector<16xf32> to vector<16x1xf32>
    %16 = vector.broadcast %15 : vector<16x1xf32> to vector<16x128xf32>
    %17 = arith.subf %13, %16 : vector<16x128xf32>
    %18 = math.exp %17 : vector<16x128xf32>
    %cst_12 = arith.constant dense<0.000000e+00> : vector<16xf32>
    %19 = vector.multi_reduction <add>, %18, %cst_12 [1] : vector<16x128xf32> to vector<16xf32>
    %20 = vector.shape_cast %19 : vector<16xf32> to vector<16x1xf32>
    %21 = vector.broadcast %20 : vector<16x1xf32> to vector<16x128xf32>
    %22 = arith.divf %18, %21 : vector<16x128xf32>
    %c0_13 = arith.constant 0 : index
    %c0_14 = arith.constant 0 : index
    %23 = vector.load %arg6[%c0_13, %c0_14] : memref<16x128xf32, #tpu.memory_space<vmem>>, vector<16x128xf32>
    tpu.vector_store %arg6[%c0_13, %c0_14], %22 {strides = array<i32>} : memref<16x128xf32, #tpu.memory_space<vmem>>, vector<16x128xf32>,
    return
  }
  func.func @transform_0(%arg0: i32) -> (i32, i32) {
    %c0_i32 = arith.constant 0 : i32
    %c0_i32_0 = arith.constant 0 : i32
    return %arg0, %c0_i32 : i32, i32
  }
  func.func @transform_1(%arg0: i32) -> (i32, i32) {
    %c0_i32 = arith.constant 0 : i32
    %c0_i32_0 = arith.constant 0 : i32
    %c0_i32_1 = arith.constant 0 : i32
    return %c0_i32, %c0_i32_0 : i32, i32
  }
  func.func @transform_2(%arg0: i32) -> (i32, i32) {
    %c0_i32 = arith.constant 0 : i32
    %c0_i32_0 = arith.constant 0 : i32
    %c0_i32_1 = arith.constant 0 : i32
    return %c0_i32, %c0_i32_0 : i32, i32
  }
  func.func @transform_3(%arg0: i32) -> (i32, i32) {
    %c0_i32 = arith.constant 0 : i32
    %c0_i32_0 = arith.constant 0 : i32
    %c0_i32_1 = arith.constant 0 : i32
    return %c0_i32, %c0_i32_0 : i32, i32
  }
  func.func @transform_4(%arg0: i32) -> (i32, i32) {
    %c0_i32 = arith.constant 0 : i32
    %c0_i32_0 = arith.constant 0 : i32
    %c0_i32_1 = arith.constant 0 : i32
    return %c0_i32, %c0_i32_0 : i32, i32
  }
  func.func @transform_5(%arg0: i32) -> (i32, i32) {
    %c0_i32 = arith.constant 0 : i32
    %c0_i32_0 = arith.constant 0 : i32
    return %arg0, %c0_i32 : i32, i32
  }
}

</mosaic_0001>

<bundles_post_ra>
// kernel: tpu_custom_call.1
= control target key start
LH: loop header
LB: loop body
LE: loop exit
PB: predicated region body
PF: predicated region fallthrough
CT: control target
= control target key end

     0   :  { %10 = vsyncpa [#allocation3], 0  ;;  %s578_s0 = inlined_call_operand.hbm [shape: bf16[16,32], index: 0, kind: input, shape index: {}]   ;;  %s579_s1 = inlined_call_operand.hbm [shape: bf16[32,128], index: 1, kind: input, shape index: {}]   ;;  %s580_s2 = inlined_call_operand.vmem [shape: f32[1,128], index: 2, kind: input, shape index: {}]   ;;  %s581_s3 = inlined_call_operand.hbm [shape: bf16[128,128], index: 3, kind: input, shape index: {}]   ;;  %s582_s4 = inlined_call_operand.vmem [shape: f32[1,128], index: 4, kind: input, shape index: {}]   ;;  %s583_s5 = inlined_call_operand.hbm [shape: f32[16,128], index: 5, kind: output, shape index: {}]  }
   0x1   :  { %11 = vsyncpa [#allocation6], 0 }
   0x2   :  { %12 = vsyncpa [#allocation4], 0  ;;  %s468_s18 = smov [#allocation5]   ;;  %s469_s20 = smov [#allocation2]  }
   0x3   :  { %s30_s19 = sshll.u32 %s468_s18, 4  ;;  %s18_s21 = sshll.u32 %s469_s20, 4  ;;  %s31_s19 = int_to_ptr.vmem [resolvable:$true] %s30_s19  ;;  %s508_s21 = int_to_ptr.vmem [resolvable:$true] %s18_s21 }
   0x4   :  { %s374_s24 = scalar_lea.hbm %s579_s1, 256 }
   0x5   :  { %p375_p0 = scmp.ne.s32.totalorder %s579_s1, %s374_s24  ;;  %p378_p1 = scmp.lt.u32.totalorder %s374_s24, %s579_s1 }
   0x7   :  { %p380_p2 = pnand %p378_p1, %p375_p0 }
   0x9   :  { %383 = shalt.err (!%p380_p2)
}
   0xa   :  { %s384_s29 = scalar_lea.vmem %s31_s19, 256  ;;  %p389_p4 = scmp.lt.s32.totalorder %s31_s19, %s31_s19 }
   0xb   :  { %p385_p3 = scmp.ne.s32.totalorder %s31_s19, %s384_s29  ;;  %p390_p5 = scmp.lt.s32.totalorder %s384_s29, %s384_s29 }
   0xd   :  { %p391_p6 = por %p390_p5, %p389_p4 }
   0xf   :  { %p392_p7 = pnand %p391_p6, %p385_p3 }
  0x11   :  { %395 = shalt.err (!%p392_p7)
}
  0x12   :  { %s470_s30 = smov 64   ;;  %s471_s6 = smov 4  }
  0x13   :  { %36 = dma.hbm_to_vmem [thread:$0]  %s579_s1, 256, %s31_s19, [#allocation6], %s470_s30, %s470_s30, %s471_s6  }
  0x14   :  { %s396_s11 = scalar_lea.hbm %s578_s0, 128 }
  0x15   :  { %p397_p8 = scmp.ne.s32.totalorder %s578_s0, %s396_s11  ;;  %p400_p9 = scmp.lt.u32.totalorder %s396_s11, %s578_s0 }
  0x17   :  { %p402_p10 = pnand %p400_p9, %p397_p8 }
  0x19   :  { %405 = shalt.err (!%p402_p10)
}
  0x1a   :  { %s406_s16 = scalar_lea.vmem %s508_s21, 128  ;;  %p411_p12 = scmp.lt.s32.totalorder %s508_s21, %s508_s21 }
  0x1b   :  { %p407_p11 = scmp.ne.s32.totalorder %s508_s21, %s406_s16  ;;  %p412_p13 = scmp.lt.s32.totalorder %s406_s16, %s406_s16 }
  0x1d   :  { %p413_p0 = por %p412_p13, %p411_p12 }
  0x1f   :  { %p414_p1 = pnand %p413_p0, %p407_p11 }
  0x21   :  { %417 = shalt.err (!%p414_p1)
}
  0x22   :  { %24 = dma.hbm_to_vmem [thread:$0]  %s578_s0, 128, %s508_s21, [#allocation3], %s470_s30, %s470_s30, %s471_s6  }
  0x23   :  { %s472_s18 = smov [#allocation7]   ;;  %s418_s23 = scalar_lea.hbm %s581_s3, 1024 }
  0x24   :  { %s44_s19 = sshll.u32 %s472_s18, 4  ;;  %p419_p2 = scmp.ne.s32.totalorder %s581_s3, %s418_s23  ;;  %s45_s19 = int_to_ptr.vmem [resolvable:$true] %s44_s19 }
  0x25   :  { %p422_p3 = scmp.lt.u32.totalorder %s418_s23, %s581_s3 }
  0x27   :  { %p424_p4 = pnand %p422_p3, %p419_p2 }
  0x29   :  { %427 = shalt.err (!%p424_p4)
}
  0x2a   :  { %s428_s28 = scalar_lea.vmem %s45_s19, 1024  ;;  %p433_p6 = scmp.lt.s32.totalorder %s45_s19, %s45_s19 }
  0x2b   :  { %p429_p5 = scmp.ne.s32.totalorder %s45_s19, %s428_s28  ;;  %p434_p7 = scmp.lt.s32.totalorder %s428_s28, %s428_s28 }
  0x2d   :  { %p435_p8 = por %p434_p7, %p433_p6 }
  0x2f   :  { %p436_p9 = pnand %p435_p8, %p429_p5 }
  0x31   :  { %439 = shalt.err (!%p436_p9)
}
  0x32   :  { %50 = dma.hbm_to_vmem [thread:$0]  %s581_s3, 1024, %s45_s19, [#allocation6], %s470_s30, %s470_s30, %s471_s6  }
  0x33   :  { %462 = dma.done.wait [#allocation3], 128  }
  0x34   :  { %463 = vsyncadd [#allocation3], 4294967168 }
  0x35   :  { %464 = dma.done.wait [#allocation6], 1280  }
  0x36   :  { %465 = vsyncadd [#allocation6], 4294966016  ;;  %v473_v0 = vmov 0.0   ;;  %vm474_vm0 = vmmov 0   ;;  %v355_v1 = vld [vmem:[#allocation5] sm:$0xff]   ;;  %v356_v2 = vld [vmem:[#allocation5 + $0x8] sm:$0xff]  }
  0x37   :  { %317 = vmatprep.subr.bf16.mxu0 %v473_v0  ;;  %321 = vmatprep.mubr.msk.bf16.mxu0 %vm474_vm0, %v473_v0  ;;  %v358_v3 = vld [vmem:[#allocation7] sm:$0xff]   ;;  %v357_v4 = vld [vmem:[#allocation2] sm:$0xff]   ;;  %vm93_vm1 = vcmask 261120   ;;  %v360_v6 = vld [vmem:[#allocation7 + $0x10] sm:$0xff]  }
  0x38   :  { %325 = vmatprep.subr.bf16.mxu1 %v473_v0  ;;  %341 = vmatprep.mubr.msk.bf16.mxu1 %vm474_vm0, %v473_v0  ;;  %v359_v5 = vld [vmem:[#allocation7 + $0x8] sm:$0xff]   ;;  %v361_v7 = vld [vmem:[#allocation7 + $0x18] sm:$0xff]   ;;  %v362_v8 = vld [vmem:[#allocation7 + $0x20] sm:$0xff]  }
  0x39   :  { %318 = vmatpush3.bf16.msra.mxu0 %v355_v1  ;;  %326 = vmatpush3.bf16.msra.mxu1 %v358_v3  ;;  %v363_v9 = vld [vmem:[#allocation7 + $0x28] sm:$0xff]   ;;  %v364_v10 = vld [vmem:[#allocation7 + $0x30] sm:$0xff]   ;;  %v365_v11 = vld [vmem:[#allocation7 + $0x38] sm:$0xff]  }
  0x3a   :  { %319 = vmatprep.subr.bf16.mxu0 %v473_v0  ;;  %327 = vmatprep.subr.bf16.mxu1 %v473_v0  ;;  %v291_v12 = vld [vmem:[%s580_s2] ss:$0 sm:$0xff]  ;;  %s475_s2 = smov [#allocation8]  }
  0x3b   :  { %v296_v22 = vld [vmem:[%s582_s4] ss:$0 sm:$0xff]  ;;  %s278_s4 = sshll.u32 %s475_s2, 4  ;;  %s279_s4 = int_to_ptr.vmem [resolvable:$true] %s278_s4 }
  0x3c   :  { %s440_s7 = scalar_lea.vmem %s279_s4, 256  ;;  %p445_p11 = scmp.lt.s32.totalorder %s279_s4, %s279_s4 }
  0x3d   :  { %320 = vmatpush3.bf16.msra.mxu0 %v356_v2  ;;  %328 = vmatpush3.bf16.msra.mxu1 %v359_v5  ;;  %p441_p10 = scmp.ne.s32.totalorder %s279_s4, %s440_s7  ;;  %p446_p12 = scmp.lt.s32.totalorder %s440_s7, %s440_s7 }
  0x3e   :  { %329 = vmatprep.subr.bf16.mxu1 %v473_v0 }
  0x3f   :  { %p447_p13 = por %p446_p12, %p445_p11 }
  0x40   :  { %322 = vmatmul.mubr.msk.bf16.vlgmr.msra.gmra.mrb[0].mxu0 %vm93_vm1, %v357_v4 }
  0x41   :  { %330 = vmatpush3.bf16.msra.mxu1 %v360_v6  ;;  %p448_p0 = pnand %p447_p13, %p441_p10 }
  0x42   :  { %331 = vmatprep.subr.bf16.mxu1 %v473_v0 }
  0x45   :  { %332 = vmatpush3.bf16.msra.mxu1 %v361_v7 }
  0x46   :  { %333 = vmatprep.subr.bf16.mxu1 %v473_v0 }
  0x49   :  { %334 = vmatpush3.bf16.msra.mxu1 %v362_v8 }
  0x4a   :  { %335 = vmatprep.subr.bf16.mxu1 %v473_v0 }
  0x4d   :  { %336 = vmatpush3.bf16.msra.mxu1 %v363_v9 }
  0x4e   :  { %337 = vmatprep.subr.bf16.mxu1 %v473_v0 }
  0x51   :  { %338 = vmatpush3.bf16.msra.mxu1 %v364_v10 }
  0x52   :  { %339 = vmatprep.subr.bf16.mxu1 %v473_v0 }
  0x55   :  { %340 = vmatpush3.bf16.msra.mxu1 %v365_v11 }
 0x113   :  { %v131_v13 = vpop.f32.mrb[0].mxu0 }
 0x114   :  { %v132_v14 = vadd.f32 %v291_v12, %v131_v13  ;;  %v323_v15 = vpop.f32.mrb[1].mxu0 }
 0x115   :  { %v134_v16 = vpop.f32.mrb[2].mxu0 }
 0x116   :  { %v135_v17 = vadd.f32 %v291_v12, %v134_v16  ;;  %v324_v18 = vpop.f32.mrb[3].mxu0  ;;  %v138_v19 = vmax.f32 %v132_v14, 0.0 }
 0x118   :  { %v139_v20 = vmax.f32 %v135_v17, 0.0 }
 0x11a   :  { %v140_v21 = vpack.c.bf16 %v139_v20, %v138_v19 }
 0x11c   :  { %342 = vmatmul.mubr.bf16.vlgmr.msra.gmra.mrb[0].mxu1 %v140_v21 }
 0x1ef   :  { %v246_v23 = vpop.f32.mrb[0].mxu1 }
 0x1f0   :  { %v247_v24 = vadd.f32 %v296_v22, %v246_v23  ;;  %v343_v25 = vpop.f32.mrb[1].mxu1 }
 0x1f1   :  { %v249_v26 = vpop.f32.mrb[2].mxu1 }
 0x1f2   :  { %253 = vmax.xlane.f32.xlu0 %v247_v24  ;;  %v344_v27 = vpop.f32.mrb[3].mxu1  ;;  %v250_v28 = vadd.f32 %v296_v22, %v249_v26 }
 0x1f6   :  { %255 = vmax.xlane.f32.xlu0 %v250_v28 }
 0x27f   :  { %v254_v29 = vpop.xlane.xlu0 %253 }
 0x280   :  { %v257_v30 = vsub.f32 %v247_v24, %v254_v29 }
 0x282   :  { %v259_v31 = vmul.f32 1.442695, %v257_v30 }
 0x283   :  { %v256_v32 = vpop.xlane.xlu0 %255 }
 0x284   :  { %366 = vpow2.f32 %v259_v31  ;;  %v258_v33 = vsub.f32 %v250_v28, %v256_v32 }
 0x286   :  { %v261_v34 = vmul.f32 1.442695, %v258_v33 }
 0x288   :  { %368 = vpow2.f32 %v261_v34 }
 0x28e   :  { %v367_v35 = vpop.eup %366 }
 0x28f   :  { %263 = vadd.xlane.f32.xlu1 %v367_v35 }
 0x292   :  { %v369_v36 = vpop.eup %368 }
 0x293   :  { %265 = vadd.xlane.f32.xlu1 %v369_v36 }
 0x31c   :  { %v264_v37 = vpop.xlane.xlu1 %263 }
 0x31d   :  { %370 = vrcp.f32 %v264_v37 }
 0x320   :  { %v266_v38 = vpop.xlane.xlu1 %265 }
 0x321   :  { %372 = vrcp.f32 %v266_v38 }
 0x327   :  { %v371_v39 = vpop.eup %370 }
 0x328   :  { %v268_v40 = vmul.f32 %v371_v39, %v367_v35 }
 0x32a   :  { %271 = vst [vmem:[#allocation8] sm:$0xff] %v268_v40 }
 0x32b   :  { %v373_v41 = vpop.eup %372 }
 0x32c   :  { %v270_v42 = vmul.f32 %v373_v41, %v369_v36 }
 0x32e   :  { %272 = vst [vmem:[#allocation8 + $0x8] sm:$0xff] %v270_v42 }
 0x32f   :  { %451 = shalt.err (!%p448_p0)
}
 0x330   :  { %s452_s10 = scalar_lea.hbm %s583_s5, 256 }
 0x331   :  { %p453_p1 = scmp.ne.s32.totalorder %s583_s5, %s452_s10  ;;  %p456_p2 = scmp.lt.u32.totalorder %s452_s10, %s583_s5 }
 0x333   :  { %p458_p3 = pnand %p456_p2, %p453_p1 }
 0x335   :  { %461 = shalt.err (!%p458_p3)
}
 0x336   :  { %s476_s15 = smov 128   ;;  %s477_s16 = smov 8  }
 0x337   :  { %284 = dma.vmem_to_hbm [thread:$0]  %s279_s4, 256, %s583_s5, [#allocation4], %s476_s15, %s476_s15, %s477_s16  }
 0x338   :  { %466 = dma.done.wait [#allocation4], 256  }
 0x339   :  { %467 = vsyncadd [#allocation4], 4294967040 }
 0x33a   :  { %288 = vsyncpa [#allocation3], 1 }
 0x33b   :  { %289 = vsyncpa [#allocation6], 1 }
 0x33c   :  { %290 = vsyncpa [#allocation4], 1 }

</bundles_post_ra>
